<compile_context>
chip_gen: v7x
topology: tpu7x:2x2x1
jax: 0.10.0
libtpu: 0.0.40
codegen_flags: <defaults>
</compile_context>

<pallas_src>
import jax
import jax.numpy as jnp
from jax.experimental import pallas as pl
from jax.experimental.pallas import tpu as pltpu

IN_F = 10
HID_F = 10
OUT_F = 5

_TB_MAX = 65536  # 64K lanes -> ~12 MiB of double-buffered f32 blocks (fits all gens)


def _cdiv(a, b):
    return (a + b - 1) // b


def _round_up(n, m):
    return _cdiv(n, m) * m


def _choose_batch_tile(batch):
    """Lane-dense batch tile.

    As large as possible (amortize the ~0.35 us per-grid-step overhead), but
    >= 2 grid steps once there is enough work (so v7x megacore uses both
    TensorCores), capped so the double-buffered blocks stay ~<= 12 MiB.
    """
    n_steps = _cdiv(batch, _TB_MAX)
    if batch > 16384:
        n_steps = max(n_steps, 2)
    n_steps = max(n_steps, 1)
    return max(128, _round_up(_cdiv(batch, n_steps), 128))


def _mlp_kernel(x_ref, w1_ref, b1_ref, w2_ref, b2_ref, o_ref):
    # x_ref: (10, TB) feature-major (batch on lanes, streamed in x dtype)
    # w1_ref: (10, 10) (out, in);  b1_ref: (10, 1) f32
    # w2_ref: (5, 10);             b2_ref: (5, 1) f32
    # o_ref: (5, TB)
    h = jnp.dot(w1_ref[...], x_ref[...], preferred_element_type=jnp.float32)
    h = jnp.maximum(h + b1_ref[...], 0.0)                   # bias bcast over lanes
    y = jnp.dot(w2_ref[...].astype(jnp.float32), h,
                preferred_element_type=jnp.float32)
    o_ref[...] = (y + b2_ref[...]).astype(o_ref.dtype)


def toy_model_forward_featuremajor(x_fm, w1, b1, w2, b2, *, batch_tile=None):
    """Preferred entry point: x_fm is (10, B) feature-major, returns (5, B).

    No wrapper-side transpose / pad / slice, so HBM traffic is the minimum
    (IN_F + OUT_F) * itemsize bytes per batch column for this HBM-bound op.
    Streams x/out in x_fm.dtype (f32 or bf16); accumulation/bias/ReLU are f32.
    """
    in_f, batch = x_fm.shape
    assert in_f == IN_F, x_fm.shape
    dtype = x_fm.dtype

    tb = batch_tile if batch_tile is not None else _choose_batch_tile(batch)
    grid = (_cdiv(batch, tb),)          # ragged tail block is masked by Pallas

    # Tiny parameter prep (a few hundred bytes): weights in the streaming dtype
    # (native bf16 MXU path when x is bf16), biases kept in f32.
    w1 = w1.astype(dtype)
    w2 = w2.astype(dtype)
    b1_2d = b1.astype(jnp.float32).reshape(HID_F, 1)
    b2_2d = b2.astype(jnp.float32).reshape(OUT_F, 1)

    itemsize = jnp.dtype(dtype).itemsize
    cost = pl.CostEstimate(
        flops=2 * (IN_F * HID_F + HID_F * OUT_F) * batch,
        transcendentals=0,
        bytes_accessed=(IN_F + OUT_F) * itemsize * batch
        + (HID_F * IN_F + OUT_F * HID_F) * itemsize
        + (HID_F + OUT_F) * 4,
    )

    out_fm = pl.pallas_call(
        _mlp_kernel,
        out_shape=jax.ShapeDtypeStruct((OUT_F, batch), dtype),
        grid_spec=pl.GridSpec(
            grid=grid,
            in_specs=[
                # Batch-tiled, lane-dense input (10 -> 16 padded sublanes only).
                pl.BlockSpec((IN_F, tb), lambda i: (0, i)),
                # Weights / biases: constant index_map -> fetched once, resident.
                pl.BlockSpec((HID_F, IN_F), lambda i: (0, 0)),
                pl.BlockSpec((HID_F, 1), lambda i: (0, 0)),
                pl.BlockSpec((OUT_F, HID_F), lambda i: (0, 0)),
                pl.BlockSpec((OUT_F, 1), lambda i: (0, 0)),
            ],
            out_specs=pl.BlockSpec((OUT_F, tb), lambda i: (0, i)),
        ),
        compiler_params=pltpu.CompilerParams(
            dimension_semantics=("parallel",),        # shard batch across TCs (v7x)
            vmem_limit_bytes=32 * 1024 * 1024,        # big tiles also fit v5e
        ),
        cost_estimate=cost,
    )(x_fm, w1, b1_2d, w2, b2_2d)
    return out_fm


def toy_model_ref(x, w1, b1, w2, b2):
    h = jnp.maximum(x @ w1.T + b1, 0.0)
    return h @ w2.T + b2


def toy_model_forward(x, w1, b1, w2, b2, *, min_pallas_batch=1024):
    """PyTorch-layout wrapper: x (B, 10) -> (B, 5)."""
    batch = x.shape[0]
    if batch < min_pallas_batch:
        # Single-tile regime: pallas_call + boundary transposes cost more than a
        # fused XLA GEMM, so just use the plain path.
        return toy_model_ref(x, w1, b1, w2, b2)
    # TODO(synk): the two .T passes below are extra HBM read+write passes (~3x
    # the minimum traffic of this HBM-bound op). Callers that can keep
    # activations feature-major should call toy_model_forward_featuremajor.
    return toy_model_forward_featuremajor(x.T, w1, b1, w2, b2).T


if __name__ == "__main__":
    key = jax.random.PRNGKey(0)
    k_x, k_w1, k_b1, k_w2, k_b2 = jax.random.split(key, 5)

    # Deterministic parameters (PyTorch Linear shapes: W is (out, in)).
    bound1 = 1.0 / (IN_F ** 0.5)
    w1 = jax.random.uniform(k_w1, (HID_F, IN_F), jnp.float32, -bound1, bound1)
    b1 = jax.random.uniform(k_b1, (HID_F,), jnp.float32, -bound1, bound1)
    bound2 = 1.0 / (HID_F ** 0.5)
    w2 = jax.random.uniform(k_w2, (OUT_F, HID_F), jnp.float32, -bound2, bound2)
    b2 = jax.random.uniform(k_b2, (OUT_F,), jnp.float32, -bound2, bound2)

    # 1) Feature-major kernel path, tiny batch padded to one 128-lane tile.
    B1 = 8
    x1 = jax.random.normal(k_x, (B1, IN_F), jnp.float32)
    out1 = jax.block_until_ready(
        toy_model_forward_featuremajor(x1.T, w1, b1, w2, b2))
    ref1 = toy_model_ref(x1, w1, b1, w2, b2)
    assert out1.shape == (OUT_F, B1), out1.shape
    assert jnp.allclose(out1.T, ref1, atol=1e-5, rtol=1e-5), "mismatch (B=8, fm)"

    # 2) Multi-step grid + ragged tail (forced small tile so 3 steps, last one
    #    partial) through the feature-major kernel.
    B2 = 300
    x2 = jax.random.normal(k_x, (B2, IN_F), jnp.float32)
    out2 = jax.block_until_ready(
        toy_model_forward_featuremajor(x2.T, w1, b1, w2, b2, batch_tile=128))
    ref2 = toy_model_ref(x2, w1, b1, w2, b2)
    assert out2.shape == (OUT_F, B2), out2.shape
    assert jnp.allclose(out2.T, ref2, atol=1e-5, rtol=1e-5), "mismatch (B=300, ragged)"

    # 3) PyTorch-layout wrapper: small-batch XLA fallback and forced kernel path.
    out3a = jax.block_until_ready(toy_model_forward(x1, w1, b1, w2, b2))
    assert out3a.shape == (B1, OUT_F)
    assert jnp.allclose(out3a, ref1, atol=1e-5, rtol=1e-5), "mismatch (wrapper fallback)"
    out3b = jax.block_until_ready(
        toy_model_forward(x2, w1, b1, w2, b2, min_pallas_batch=0))
    assert out3b.shape == (B2, OUT_F)
    assert jnp.allclose(out3b, ref2, atol=1e-5, rtol=1e-5), "mismatch (wrapper kernel)"

    # 4) bf16 streaming path (halves HBM bytes; f32 accumulation in-kernel).
    B4 = 256
    x4 = jax.random.normal(k_x, (B4, IN_F), jnp.float32)
    out4 = jax.block_until_ready(
        toy_model_forward_featuremajor(x4.T.astype(jnp.bfloat16), w1, b1, w2, b2))
    ref4 = toy_model_ref(x4, w1, b1, w2, b2)
    assert out4.dtype == jnp.bfloat16 and out4.shape == (OUT_F, B4)
    assert jnp.allclose(out4.T.astype(jnp.float32), ref4, atol=5e-2, rtol=5e-2), \
        "mismatch (bf16 streaming)"

    print("KERNEL_OK")
</pallas_src>

<mosaic_0001>
module attributes {stable_mosaic.version = 11 : i64} {
  func.func @_mlp_kernel(%arg0: i32, %arg1: memref<10x128xf32, #tpu.memory_space<vmem>>, %arg2: memref<10x10xf32, #tpu.memory_space<vmem>>, %arg3: memref<10x1xf32, #tpu.memory_space<vmem>>, %arg4: memref<5x10xf32, #tpu.memory_space<vmem>>, %arg5: memref<5x1xf32, #tpu.memory_space<vmem>>, %arg6: memref<5x128xf32, #tpu.memory_space<vmem>>) attributes {dimension_semantics = [#tpu.dimension_semantics<parallel>], iteration_bounds = array<i64: 1>, scalar_prefetch = 0 : i64, scratch_operands = 0 : i64, tpu.core_type = #tpu.core_type<tc>, window_params = [{transform_indices = @transform_0, window_bounds = array<i64: 10, 128>}, {pipeline_mode = #tpu.pipeline_mode<synchronous>, transform_indices = @transform_1, window_bounds = array<i64: 10, 10>}, {pipeline_mode = #tpu.pipeline_mode<synchronous>, transform_indices = @transform_2, window_bounds = array<i64: 10, 1>}, {pipeline_mode = #tpu.pipeline_mode<synchronous>, transform_indices = @transform_3, window_bounds = array<i64: 5, 10>}, {pipeline_mode = #tpu.pipeline_mode<synchronous>, transform_indices = @transform_4, window_bounds = array<i64: 5, 1>}, {transform_indices = @transform_5, window_bounds = array<i64: 5, 128>}]} {
    %c0 = arith.constant 0 : index
    %c0_0 = arith.constant 0 : index
    %0 = vector.load %arg2[%c0, %c0_0] : memref<10x10xf32, #tpu.memory_space<vmem>>, vector<10x10xf32>
    %c0_1 = arith.constant 0 : index
    %c0_2 = arith.constant 0 : index
    %1 = vector.load %arg1[%c0_1, %c0_2] : memref<10x128xf32, #tpu.memory_space<vmem>>, vector<10x128xf32>
    %cst = arith.constant dense<0.000000e+00> : vector<10x128xf32>
    %2 = tpu.matmul %0, %1, %cst {dimension_numbers = #tpu.dot_dimension_numbers<[1], [0], [0], [1], [0, 0, 1, 1], [], []>} : vector<10x10xf32>, vector<10x128xf32>, vector<10x128xf32> -> vector<10x128xf32>
    %c0_3 = arith.constant 0 : index
    %c0_4 = arith.constant 0 : index
    %3 = vector.load %arg3[%c0_3, %c0_4] : memref<10x1xf32, #tpu.memory_space<vmem>>, vector<10x1xf32>
    %4 = vector.broadcast %3 : vector<10x1xf32> to vector<10x128xf32>
    %5 = arith.addf %2, %4 : vector<10x128xf32>
    %cst_5 = arith.constant 0.000000e+00 : f32
    %6 = vector.broadcast %cst_5 : f32 to vector<10x128xf32>
    %7 = arith.maximumf %5, %6 : vector<10x128xf32>
    %c0_6 = arith.constant 0 : index
    %c0_7 = arith.constant 0 : index
    %8 = vector.load %arg4[%c0_6, %c0_7] : memref<5x10xf32, #tpu.memory_space<vmem>>, vector<5x10xf32>
    %cst_8 = arith.constant dense<0.000000e+00> : vector<5x128xf32>
    %9 = tpu.matmul %8, %7, %cst_8 {dimension_numbers = #tpu.dot_dimension_numbers<[1], [0], [0], [1], [0, 0, 1, 1], [], []>} : vector<5x10xf32>, vector<10x128xf32>, vector<5x128xf32> -> vector<5x128xf32>
    %c0_9 = arith.constant 0 : index
    %c0_10 = arith.constant 0 : index
    %10 = vector.load %arg5[%c0_9, %c0_10] : memref<5x1xf32, #tpu.memory_space<vmem>>, vector<5x1xf32>
    %11 = vector.broadcast %10 : vector<5x1xf32> to vector<5x128xf32>
    %12 = arith.addf %9, %11 : vector<5x128xf32>
    %c0_11 = arith.constant 0 : index
    %c0_12 = arith.constant 0 : index
    %13 = vector.load %arg6[%c0_11, %c0_12] : memref<5x128xf32, #tpu.memory_space<vmem>>, vector<5x128xf32>
    tpu.vector_store %arg6[%c0_11, %c0_12], %12 {strides = array<i32>} : memref<5x128xf32, #tpu.memory_space<vmem>>, vector<5x128xf32>,
    return
  }
  func.func @transform_0(%arg0: i32) -> (i32, i32) {
    %c0_i32 = arith.constant 0 : i32
    %c0_i32_0 = arith.constant 0 : i32
    return %c0_i32, %arg0 : i32, i32
  }
  func.func @transform_1(%arg0: i32) -> (i32, i32) {
    %c0_i32 = arith.constant 0 : i32
    %c0_i32_0 = arith.constant 0 : i32
    %c0_i32_1 = arith.constant 0 : i32
    return %c0_i32, %c0_i32_0 : i32, i32
  }
  func.func @transform_2(%arg0: i32) -> (i32, i32) {
    %c0_i32 = arith.constant 0 : i32
    %c0_i32_0 = arith.constant 0 : i32
    %c0_i32_1 = arith.constant 0 : i32
    return %c0_i32, %c0_i32_0 : i32, i32
  }
  func.func @transform_3(%arg0: i32) -> (i32, i32) {
    %c0_i32 = arith.constant 0 : i32
    %c0_i32_0 = arith.constant 0 : i32
    %c0_i32_1 = arith.constant 0 : i32
    return %c0_i32, %c0_i32_0 : i32, i32
  }
  func.func @transform_4(%arg0: i32) -> (i32, i32) {
    %c0_i32 = arith.constant 0 : i32
    %c0_i32_0 = arith.constant 0 : i32
    %c0_i32_1 = arith.constant 0 : i32
    return %c0_i32, %c0_i32_0 : i32, i32
  }
  func.func @transform_5(%arg0: i32) -> (i32, i32) {
    %c0_i32 = arith.constant 0 : i32
    %c0_i32_0 = arith.constant 0 : i32
    return %c0_i32, %arg0 : i32, i32
  }
}

</mosaic_0001>

<bundles_post_ra>
// kernel: tpu_custom_call.1
= control target key start
LH: loop header
LB: loop body
LE: loop exit
PB: predicated region body
PF: predicated region fallthrough
CT: control target
= control target key end

     0   :  { %vm44_vm0 = vcmask 1041408   ;;  %vm291_vm1 = vmmov 1   ;;  %vm37_vm3 = vcmask 80896   ;;  %v292_v6 = vmov 0   ;;  %s376_s0 = inlined_call_operand.vmem [shape: f32[10,8], index: 0, kind: input, shape index: {}]   ;;  %s377_s1 = inlined_call_operand.vmem [shape: f32[10,10], index: 1, kind: input, shape index: {}]   ;;  %s378_s2 = inlined_call_operand.vmem [shape: f32[10,1], index: 2, kind: input, shape index: {}]   ;;  %s379_s3 = inlined_call_operand.vmem [shape: f32[5,10], index: 3, kind: input, shape index: {}]   ;;  %s380_s4 = inlined_call_operand.vmem [shape: f32[5,1], index: 4, kind: input, shape index: {}]   ;;  %s381_s5 = inlined_call_operand.hbm [shape: f32[5,8], index: 5, kind: output, shape index: {}]  }
   0x1   :  { %v23_v0 = vld [vmem:[%s376_s0] sm:$0xff]  ;;  %v24_v1 = vld [vmem:[%s376_s0 + $0x8] sm:$0x3]  ;;  %vm336_vm2 = vmpackc.low %vm44_vm0, %vm291_vm1  ;;  %265 = vset.pattern.permute.xlu0 %v292_v6 }
   0x2   :  { %v21_v2 = vld [vmem:[%s377_s1] sm:$0xff]  ;;  %v249_v3 = vpack.c.bf16 %v24_v1, %v23_v0 }
   0x3   :  { %v25_v5 = vld [vmem:[%s378_s2] sm:$0xff]  ;;  %239 = vmatprep.mubr.msk.f32.mxu0 %vm37_vm3, %v21_v2 }
   0x4   :  { %10 = vsyncpa [#allocation3], 0  ;;  %251 = vmatprep.subr.msk.bf16.mxu0 %vm336_vm2, %v249_v3  ;;  %29 = vperm.xlu0 %265, %v25_v5   ;;  %v22_v7 = vld [vmem:[%s377_s1 + $0x8] sm:$0x3]  ;;  %v293_v9 = vmov 0.0|0.0   ;;  %vm294_vm4 = vmmov 0  }
   0x5   :  { %254 = vmatpush3.bf16.msk.msra.mxu0 %vm336_vm2, %v249_v3  ;;  %v26_v8 = vld [vmem:[%s378_s2 + $0x8] sm:$0x3]  ;;  %266 = vset.pattern.permute.xlu1 %v292_v6  ;;  %v295_v10 = vmov 0.0   ;;  %v126_v11 = vld [vmem:[%s380_s4] sm:$0x1f]  ;;  %s296_s4 = smov [#allocation2]  }
   0x6   :  { %255 = vmatprep.subr.bf16.mxu1 %v293_v9  ;;  %246 = vmatprep.mubr.msk.f32.mxu1 %vm294_vm4, %v295_v10  ;;  %v125_v21 = vld [vmem:[%s379_s3] sm:$0x1f]  ;;  %s215_s6 = sshll.u32 %s296_s4, 4  ;;  %s216_s6 = int_to_ptr.vmem [resolvable:$true] %s215_s6 }
   0x7   :  { %129 = vperm.xlu1 %266, %v126_v11   ;;  %s267_s7 = scalar_lea.vmem %s216_s6, 128  ;;  %p272_p1 = scmp.lt.s32.totalorder %s216_s6, %s216_s6 }
   0x8   :  { %240 = vmatmul.mubr.msk.f32.vlgmr.msra.gmra.mrb[0].mxu0 %vm37_vm3, %v22_v7  ;;  %34 = vperm.xlu0 %265, %v26_v8   ;;  %p268_p0 = scmp.ne.s32.totalorder %s216_s6, %s267_s7  ;;  %p273_p2 = scmp.lt.s32.totalorder %s267_s7, %s267_s7 }
   0xa   :  { %p274_p3 = por %p273_p2, %p272_p1 }
   0xc   :  { %p275_p4 = pnand %p274_p3, %p268_p0 }
  0x83   :  { %v30_v12 = vpop.permute.xlu0 %29 }
  0x86   :  { %v130_v22 = vpop.permute.xlu1 %129 }
  0x87   :  { %v35_v13 = vpop.permute.xlu0 %34 }
  0xdb   :  { %v241_v14 = vpop.f32.mrb[0].mxu0 }
  0xdc   :  { %v120_v15 = vadd.f32 %v241_v14, %v35_v13  ;;  %v114_v16 = vpop.f32.mrb[1].mxu0 }
  0xdd   :  { %v115_v17 = vadd.f32 %v114_v16, %v30_v12 }
  0xde   :  { %v124_v18 = vmax.f32 %v120_v15, 0.0 }
  0xdf   :  { %v123_v19 = vmax.f32 %v115_v17, 0.0 }
  0xe1   :  { %v256_v20 = vpack.c.bf16 %v124_v18, %v123_v19 }
  0xe3   :  { %258 = vmatpush3.bf16.msk.msra.mxu1 %vm336_vm2, %v256_v20 }
  0xe6   :  { %247 = vmatmul.mubr.msk.f32.vlgmr.msra.gmra.mrb[0].mxu1 %vm37_vm3, %v125_v21 }
 0x1b9   :  { %v204_v23 = vpop.f32.mrb[0].mxu1 }
 0x1ba   :  { %v205_v24 = vadd.f32 %v204_v23, %v130_v22  ;;  %v248_v25 = vpop.f32.mrb[1].mxu1 }
 0x1bc   :  { %208 = vst [vmem:[#allocation2] sm:$0x1f] %v205_v24 }
 0x1bd   :  { %278 = shalt.err (!%p275_p4)
}
 0x1be   :  { %s279_s3 = scalar_lea.hbm %s381_s5, 128 }
 0x1bf   :  { %p280_p5 = scmp.ne.s32.totalorder %s381_s5, %s279_s3  ;;  %p283_p6 = scmp.lt.u32.totalorder %s279_s3, %s381_s5 }
 0x1c1   :  { %p285_p7 = pnand %p283_p6, %p280_p5 }
 0x1c3   :  { %288 = shalt.err (!%p285_p7)
}
 0x1c4   :  { %218 = dma.vmem_to_hbm [thread:$0]  %s216_s6, 128, %s381_s5, [#allocation3]  }
 0x1c5   :  { %289 = dma.done.wait [#allocation3], 128  }
 0x1c6   :  { %290 = vsyncadd [#allocation3], 4294967168 }
 0x1c7   :  { %222 = vsyncpa [#allocation3], 1 }

</bundles_post_ra>
